<compile_context>
chip_gen: v7x
topology: tpu7x:2x2x1
jax: 0.10.0
libtpu: 0.0.40
codegen_flags: <defaults>
</compile_context>

<pallas_src>
import math
from functools import partial

import jax
import jax.numpy as jnp
from jax.experimental import pallas as pl
from jax.experimental.pallas import tpu as pltpu

LANE = 128  # lane width: hidden-layer feature padding target


def _round_up(x, m):
    return ((x + m - 1) // m) * m


def _cdiv(a, b):
    return (a + b - 1) // b


def _pad2d(a, rows, cols):
    return jnp.pad(a, ((0, rows - a.shape[0]), (0, cols - a.shape[1])))


def dqn_kernel(x_ref, w1_ref, b1_ref, w2_ref, b2_ref, w3_ref, b3_ref, out_ref):
    # bf16 MXU matmuls with f32 accumulation; bias/ReLU epilogue in f32.
    x = x_ref[...]                                                    # bf16 (TB, S)
    h1 = jnp.dot(x, w1_ref[...], preferred_element_type=jnp.float32)
    h1 = jnp.maximum(h1 + b1_ref[...], 0.0)                           # f32 (TB, H1p)
    h2 = jnp.dot(h1.astype(jnp.bfloat16), w2_ref[...],
                 preferred_element_type=jnp.float32)
    h2 = jnp.maximum(h2 + b2_ref[...], 0.0)                           # f32 (TB, H2p)
    out_ref[...] = (jnp.dot(h2.astype(jnp.bfloat16), w3_ref[...],
                            preferred_element_type=jnp.float32)
                    + b3_ref[...])                                    # f32 (TB, Ap)


def prepare_dqn_params(params):
    """Pad/cast parameters ONCE (hoisted out of the per-call forward path).

    Math layout: weights [in_features, out_features], biases [1, out_features].
    Hidden dims are padded to 128 (lane-dense MXU tiles); the action dim only
    to 8 (keeps the output HBM stream narrow). Weights -> bf16, biases stay f32.
    """
    w1, b1 = params["w1"], params["b1"]
    w2, b2 = params["w2"], params["b2"]
    w3, b3 = params["w3"], params["b3"]
    S, H1 = w1.shape
    H2, A = w2.shape[1], w3.shape[1]
    H1p, H2p = _round_up(H1, LANE), _round_up(H2, LANE)
    Ap = _round_up(A, 8)
    return {
        "w1": _pad2d(w1, S, H1p).astype(jnp.bfloat16),
        "b1": _pad2d(b1, 1, H1p),
        "w2": _pad2d(w2, H1p, H2p).astype(jnp.bfloat16),
        "b2": _pad2d(b2, 1, H2p),
        "w3": _pad2d(w3, H2p, Ap).astype(jnp.bfloat16),
        "b3": _pad2d(b3, 1, Ap),
    }


def _choose_tiling(B):
    """Pick (block_b, padded_B, num_tiles)."""
    B16 = _round_up(max(B, 1), 16)
    if B16 <= 1024:
        # Single tile: per-step grid overhead dominates tiny tiles, so don't split.
        return B16, B16, 1
    # Large batch: even number (>=2) of tiles so both v7x TensorCores get work,
    # tiles capped ~2048 rows (a few hundred KB double-buffered -> far under VMEM).
    n = _cdiv(B16, 2048)
    n = max(2, n + (n % 2))
    block_b = _round_up(_cdiv(B16, n), 16)
    return block_b, block_b * n, n


@partial(jax.jit, static_argnums=(2,))
def _dqn_forward_padded(x, pp, action_size):
    """x: [B, S] f32; pp: pre-padded params from prepare_dqn_params."""
    B, S = x.shape
    H1p = pp["w1"].shape[1]
    H2p = pp["w2"].shape[1]
    Ap = pp["w3"].shape[1]

    block_b, B_p, num_tiles = _choose_tiling(B)

    # Only the batch dim is padded; the feature dim stays at its real size
    # (BlockSpec last dim == full array is legal). Fuses with the kernel under jit.
    x_p = jnp.pad(x, ((0, B_p - B), (0, 0))).astype(jnp.bfloat16)

    flops = 2 * B_p * (S * H1p + H1p * H2p + H2p * Ap)
    bytes_accessed = (B_p * S * 2                                   # x (bf16)
                      + (S * H1p + H1p * H2p + H2p * Ap) * 2        # weights (bf16)
                      + (H1p + H2p + Ap) * 4                        # biases (f32)
                      + B_p * Ap * 4)                               # output (f32)

    out_p = pl.pallas_call(
        dqn_kernel,
        out_shape=jax.ShapeDtypeStruct((B_p, Ap), jnp.float32),
        grid_spec=pltpu.PrefetchScalarGridSpec(
            num_scalar_prefetch=0,
            grid=(num_tiles,),
            in_specs=[
                # Activations: tiled over batch; last dim = full array (no 128 pad).
                pl.BlockSpec((block_b, S), lambda i: (i, 0)),
                # Weights/biases: constant block index -> VMEM-resident across grid.
                pl.BlockSpec((S, H1p), lambda i: (0, 0)),
                pl.BlockSpec((1, H1p), lambda i: (0, 0)),
                pl.BlockSpec((H1p, H2p), lambda i: (0, 0)),
                pl.BlockSpec((1, H2p), lambda i: (0, 0)),
                pl.BlockSpec((H2p, Ap), lambda i: (0, 0)),
                pl.BlockSpec((1, Ap), lambda i: (0, 0)),
            ],
            # Narrow output (Ap == 8 for small action spaces): tiny writeback stream.
            out_specs=pl.BlockSpec((block_b, Ap), lambda i: (i, 0)),
        ),
        compiler_params=pltpu.CompilerParams(
            dimension_semantics=("parallel",),  # batch tiles shard across TCs (v7x)
        ),
        cost_estimate=pl.CostEstimate(
            flops=flops, transcendentals=0, bytes_accessed=bytes_accessed),
    )(x_p, pp["w1"], pp["b1"], pp["w2"], pp["b2"], pp["w3"], pp["b3"])

    return out_p[:B, :action_size]


def dqn_forward(x, padded_params, action_size):
    """Forward pass matching DQN.forward: fc3(relu(fc2(relu(fc1(x)))))."""
    return _dqn_forward_padded(x, padded_params, int(action_size))


def init_dqn_params(key, state_size, action_size, fc1_units=64, fc2_units=64):
    """Deterministic init mimicking PyTorch nn.Linear default U[-1/sqrt(fan_in), 1/sqrt(fan_in)]."""
    keys = jax.random.split(key, 6)

    def linear(kw, kb, fan_in, fan_out):
        bound = 1.0 / math.sqrt(fan_in)
        w = jax.random.uniform(kw, (fan_in, fan_out), jnp.float32, -bound, bound)
        b = jax.random.uniform(kb, (1, fan_out), jnp.float32, -bound, bound)
        return w, b

    w1, b1 = linear(keys[0], keys[1], state_size, fc1_units)
    w2, b2 = linear(keys[2], keys[3], fc1_units, fc2_units)
    w3, b3 = linear(keys[4], keys[5], fc2_units, action_size)
    return {"w1": w1, "b1": b1, "w2": w2, "b2": b2, "w3": w3, "b3": b3}


def _reference(x, params):
    """Pure-JAX reference with the same bf16-matmul / f32-epilogue numerics."""
    bf = jnp.bfloat16
    h1 = jnp.maximum(jnp.dot(x.astype(bf), params["w1"].astype(bf),
                             preferred_element_type=jnp.float32) + params["b1"], 0.0)
    h2 = jnp.maximum(jnp.dot(h1.astype(bf), params["w2"].astype(bf),
                             preferred_element_type=jnp.float32) + params["b2"], 0.0)
    return jnp.dot(h2.astype(bf), params["w3"].astype(bf),
                   preferred_element_type=jnp.float32) + params["b3"]


if __name__ == "__main__":
    key = jax.random.PRNGKey(0)
    k_x, k_x2, k_x3, k_p = jax.random.split(key, 4)

    state_size = 8
    action_size = 4

    raw_params = init_dqn_params(k_p, state_size, action_size, fc1_units=64, fc2_units=64)
    padded_params = prepare_dqn_params(raw_params)  # pad/cast hoisted out of forward

    # Small "acting" batch (single-tile path, batch padding 2 -> 16).
    x = jax.random.normal(k_x, (2, state_size), dtype=jnp.float32)
    out = dqn_forward(x, padded_params, action_size)
    jax.block_until_ready(out)
    assert out.shape == (2, action_size)
    assert jnp.allclose(out, _reference(x, raw_params), atol=2e-3, rtol=2e-3)

    # Medium "training" batch (still a single tile — no grid-step overhead).
    x2 = jax.random.normal(k_x2, (384, state_size), dtype=jnp.float32)
    out2 = dqn_forward(x2, padded_params, action_size)
    jax.block_until_ready(out2)
    assert out2.shape == (384, action_size)
    assert jnp.allclose(out2, _reference(x2, raw_params), atol=2e-3, rtol=2e-3)

    # Large batch (2 parallel tiles of 1152 rows -> exercises the multi-tile grid).
    x3 = jax.random.normal(k_x3, (2304, state_size), dtype=jnp.float32)
    out3 = dqn_forward(x3, padded_params, action_size)
    jax.block_until_ready(out3)
    assert out3.shape == (2304, action_size)
    assert jnp.allclose(out3, _reference(x3, raw_params), atol=2e-3, rtol=2e-3)

    print("KERNEL_OK")
</pallas_src>

<mosaic_0001>
module attributes {stable_mosaic.version = 11 : i64} {
  func.func @dqn_kernel(%arg0: i32, %arg1: memref<16x8xbf16, #tpu.memory_space<vmem>>, %arg2: memref<8x128xbf16, #tpu.memory_space<vmem>>, %arg3: memref<1x128xf32, #tpu.memory_space<vmem>>, %arg4: memref<128x128xbf16, #tpu.memory_space<vmem>>, %arg5: memref<1x128xf32, #tpu.memory_space<vmem>>, %arg6: memref<128x8xbf16, #tpu.memory_space<vmem>>, %arg7: memref<1x8xf32, #tpu.memory_space<vmem>>, %arg8: memref<16x8xf32, #tpu.memory_space<vmem>>) attributes {dimension_semantics = [#tpu.dimension_semantics<parallel>], iteration_bounds = array<i64: 1>, scalar_prefetch = 0 : i64, scratch_operands = 0 : i64, tpu.core_type = #tpu.core_type<tc>, window_params = [{transform_indices = @transform_0, window_bounds = array<i64: 16, 8>}, {pipeline_mode = #tpu.pipeline_mode<synchronous>, transform_indices = @transform_1, window_bounds = array<i64: 8, 128>}, {pipeline_mode = #tpu.pipeline_mode<synchronous>, transform_indices = @transform_2, window_bounds = array<i64: 1, 128>}, {pipeline_mode = #tpu.pipeline_mode<synchronous>, transform_indices = @transform_3, window_bounds = array<i64: 128, 128>}, {pipeline_mode = #tpu.pipeline_mode<synchronous>, transform_indices = @transform_4, window_bounds = array<i64: 1, 128>}, {pipeline_mode = #tpu.pipeline_mode<synchronous>, transform_indices = @transform_5, window_bounds = array<i64: 128, 8>}, {pipeline_mode = #tpu.pipeline_mode<synchronous>, transform_indices = @transform_6, window_bounds = array<i64: 1, 8>}, {transform_indices = @transform_7, window_bounds = array<i64: 16, 8>}]} {
    %c0 = arith.constant 0 : index
    %c0_0 = arith.constant 0 : index
    %0 = vector.load %arg1[%c0, %c0_0] : memref<16x8xbf16, #tpu.memory_space<vmem>>, vector<16x8xbf16>
    %c0_1 = arith.constant 0 : index
    %c0_2 = arith.constant 0 : index
    %1 = vector.load %arg2[%c0_1, %c0_2] : memref<8x128xbf16, #tpu.memory_space<vmem>>, vector<8x128xbf16>
    %cst = arith.constant dense<0.000000e+00> : vector<16x128xf32>
    %2 = tpu.matmul %0, %1, %cst {dimension_numbers = #tpu.dot_dimension_numbers<[1], [0], [0], [1], [0, 0, 1, 1], [], []>} : vector<16x8xbf16>, vector<8x128xbf16>, vector<16x128xf32> -> vector<16x128xf32>
    %c0_3 = arith.constant 0 : index
    %c0_4 = arith.constant 0 : index
    %3 = vector.load %arg3[%c0_3, %c0_4] : memref<1x128xf32, #tpu.memory_space<vmem>>, vector<1x128xf32>
    %4 = vector.broadcast %3 : vector<1x128xf32> to vector<16x128xf32>
    %5 = arith.addf %2, %4 : vector<16x128xf32>
    %cst_5 = arith.constant 0.000000e+00 : f32
    %6 = vector.broadcast %cst_5 : f32 to vector<16x128xf32>
    %7 = arith.maximumf %5, %6 : vector<16x128xf32>
    %8 = arith.truncf %7 : vector<16x128xf32> to vector<16x128xbf16>
    %c0_6 = arith.constant 0 : index
    %c0_7 = arith.constant 0 : index
    %9 = vector.load %arg4[%c0_6, %c0_7] : memref<128x128xbf16, #tpu.memory_space<vmem>>, vector<128x128xbf16>
    %cst_8 = arith.constant dense<0.000000e+00> : vector<16x128xf32>
    %10 = tpu.matmul %8, %9, %cst_8 {dimension_numbers = #tpu.dot_dimension_numbers<[1], [0], [0], [1], [0, 0, 1, 1], [], []>} : vector<16x128xbf16>, vector<128x128xbf16>, vector<16x128xf32> -> vector<16x128xf32>
    %c0_9 = arith.constant 0 : index
    %c0_10 = arith.constant 0 : index
    %11 = vector.load %arg5[%c0_9, %c0_10] : memref<1x128xf32, #tpu.memory_space<vmem>>, vector<1x128xf32>
    %12 = vector.broadcast %11 : vector<1x128xf32> to vector<16x128xf32>
    %13 = arith.addf %10, %12 : vector<16x128xf32>
    %cst_11 = arith.constant 0.000000e+00 : f32
    %14 = vector.broadcast %cst_11 : f32 to vector<16x128xf32>
    %15 = arith.maximumf %13, %14 : vector<16x128xf32>
    %16 = arith.truncf %15 : vector<16x128xf32> to vector<16x128xbf16>
    %c0_12 = arith.constant 0 : index
    %c0_13 = arith.constant 0 : index
    %17 = vector.load %arg6[%c0_12, %c0_13] : memref<128x8xbf16, #tpu.memory_space<vmem>>, vector<128x8xbf16>
    %cst_14 = arith.constant dense<0.000000e+00> : vector<16x8xf32>
    %18 = tpu.matmul %16, %17, %cst_14 {dimension_numbers = #tpu.dot_dimension_numbers<[1], [0], [0], [1], [0, 0, 1, 1], [], []>} : vector<16x128xbf16>, vector<128x8xbf16>, vector<16x8xf32> -> vector<16x8xf32>
    %c0_15 = arith.constant 0 : index
    %c0_16 = arith.constant 0 : index
    %19 = vector.load %arg7[%c0_15, %c0_16] : memref<1x8xf32, #tpu.memory_space<vmem>>, vector<1x8xf32>
    %20 = vector.broadcast %19 : vector<1x8xf32> to vector<16x8xf32>
    %21 = arith.addf %18, %20 : vector<16x8xf32>
    %c0_17 = arith.constant 0 : index
    %c0_18 = arith.constant 0 : index
    %22 = vector.load %arg8[%c0_17, %c0_18] : memref<16x8xf32, #tpu.memory_space<vmem>>, vector<16x8xf32>
    tpu.vector_store %arg8[%c0_17, %c0_18], %21 {strides = array<i32>} : memref<16x8xf32, #tpu.memory_space<vmem>>, vector<16x8xf32>,
    return
  }
  func.func @transform_0(%arg0: i32) -> (i32, i32) {
    %c0_i32 = arith.constant 0 : i32
    %c0_i32_0 = arith.constant 0 : i32
    return %arg0, %c0_i32 : i32, i32
  }
  func.func @transform_1(%arg0: i32) -> (i32, i32) {
    %c0_i32 = arith.constant 0 : i32
    %c0_i32_0 = arith.constant 0 : i32
    %c0_i32_1 = arith.constant 0 : i32
    return %c0_i32, %c0_i32_0 : i32, i32
  }
  func.func @transform_2(%arg0: i32) -> (i32, i32) {
    %c0_i32 = arith.constant 0 : i32
    %c0_i32_0 = arith.constant 0 : i32
    %c0_i32_1 = arith.constant 0 : i32
    return %c0_i32, %c0_i32_0 : i32, i32
  }
  func.func @transform_3(%arg0: i32) -> (i32, i32) {
    %c0_i32 = arith.constant 0 : i32
    %c0_i32_0 = arith.constant 0 : i32
    %c0_i32_1 = arith.constant 0 : i32
    return %c0_i32, %c0_i32_0 : i32, i32
  }
  func.func @transform_4(%arg0: i32) -> (i32, i32) {
    %c0_i32 = arith.constant 0 : i32
    %c0_i32_0 = arith.constant 0 : i32
    %c0_i32_1 = arith.constant 0 : i32
    return %c0_i32, %c0_i32_0 : i32, i32
  }
  func.func @transform_5(%arg0: i32) -> (i32, i32) {
    %c0_i32 = arith.constant 0 : i32
    %c0_i32_0 = arith.constant 0 : i32
    %c0_i32_1 = arith.constant 0 : i32
    return %c0_i32, %c0_i32_0 : i32, i32
  }
  func.func @transform_6(%arg0: i32) -> (i32, i32) {
    %c0_i32 = arith.constant 0 : i32
    %c0_i32_0 = arith.constant 0 : i32
    %c0_i32_1 = arith.constant 0 : i32
    return %c0_i32, %c0_i32_0 : i32, i32
  }
  func.func @transform_7(%arg0: i32) -> (i32, i32) {
    %c0_i32 = arith.constant 0 : i32
    %c0_i32_0 = arith.constant 0 : i32
    return %arg0, %c0_i32 : i32, i32
  }
}

</mosaic_0001>

<bundles_post_ra>
// kernel: _dqn_forward_padded.1
= control target key start
LH: loop header
LB: loop body
LE: loop exit
PB: predicated region body
PF: predicated region fallthrough
CT: control target
= control target key end

     0   :  { %vm46_vm0 = vcmask 1043456   ;;  %v433_v0 = vmov 0.0   ;;  %vm434_vm1 = vmmov 0   ;;  %vm42_vm2 = vcmask 64512   ;;  %s567_s1 = inlined_call_operand.vmem [shape: bf16[8,128], index: 1, kind: input, shape index: {}]   ;;  %s568_s0 = inlined_call_operand.vmem [shape: bf16[16,8], index: 0, kind: input, shape index: {}]   ;;  %s569_s3 = inlined_call_operand.vmem [shape: bf16[128,128], index: 3, kind: input, shape index: {}]   ;;  %s570_s5 = inlined_call_operand.vmem [shape: bf16[128,8], index: 5, kind: input, shape index: {}]   ;;  %s571_s2 = inlined_call_operand.vmem [shape: f32[1,128], index: 2, kind: input, shape index: {}]   ;;  %s572_s4 = inlined_call_operand.vmem [shape: f32[1,128], index: 4, kind: input, shape index: {}]   ;;  %s573_s6 = inlined_call_operand.vmem [shape: f32[1,8], index: 6, kind: input, shape index: {}]   ;;  %s574_s7 = inlined_call_operand.vmem [shape: f32[16,8], index: 7, kind: output, shape index: {}]  }
   0x1   :  { %368 = vmatprep.subr.bf16.mxu0 %v433_v0  ;;  %v29_v1 = vld [vmem:[%s567_s1] sm:$0xf]  ;;  %370 = vmatprep.mubr.msk.bf16.mxu0 %vm434_vm1, %v433_v0  ;;  %v418_v5 = vld [vmem:[%s569_s3 + $0x8] sm:$0xff]   ;;  %v419_v6 = vld [vmem:[%s569_s3 + $0x10] sm:$0xff]  }
   0x2   :  { %v48_v2 = vsel %vm46_vm0, %v29_v1, 0  ;;  %v416_v3 = vld [vmem:[%s568_s0] sm:$0xff]   ;;  %374 = vmatprep.subr.bf16.mxu1 %v433_v0  ;;  %390 = vmatprep.mubr.msk.bf16.mxu1 %vm434_vm1, %v433_v0  ;;  %v420_v7 = vld [vmem:[%s569_s3 + $0x18] sm:$0xff]   ;;  %v422_v9 = vld [vmem:[%s569_s3 + $0x28] sm:$0xff]  }
   0x3   :  { %369 = vmatpush3.bf16.msra.mxu0 %v48_v2  ;;  %v417_v4 = vld [vmem:[%s569_s3] sm:$0xff]   ;;  %v423_v10 = vld [vmem:[%s569_s3 + $0x30] sm:$0xff]   ;;  %v424_v11 = vld [vmem:[%s569_s3 + $0x38] sm:$0xff]  }
   0x4   :  { %394 = vmatprep.subr.bf16.mxu0 %v433_v0  ;;  %375 = vmatpush3.bf16.msra.mxu1 %v417_v4  ;;  %v421_v8 = vld [vmem:[%s569_s3 + $0x20] sm:$0xff]   ;;  %v426_v13 = vld [vmem:[%s570_s5 + $0x8] sm:$0xff]   ;;  %v427_v14 = vld [vmem:[%s570_s5 + $0x10] sm:$0xff]  }
   0x5   :  { %376 = vmatprep.subr.bf16.mxu1 %v433_v0  ;;  %v425_v12 = vld [vmem:[%s570_s5] sm:$0xff]   ;;  %v428_v15 = vld [vmem:[%s570_s5 + $0x18] sm:$0xff]   ;;  %v430_v17 = vld [vmem:[%s570_s5 + $0x28] sm:$0xff]  }
   0x6   :  { %371 = vmatmul.mubr.msk.bf16.vlgmr.msra.gmra.mrb[0].mxu0 %vm42_vm2, %v416_v3  ;;  %v429_v16 = vld [vmem:[%s570_s5 + $0x20] sm:$0xff]   ;;  %v431_v28 = vld [vmem:[%s570_s5 + $0x30] sm:$0xff]   ;;  %v432_v29 = vld [vmem:[%s570_s5 + $0x38] sm:$0xff]  }
   0x7   :  { %410 = vmatprep.mubr.msk.bf16.mxu0 %vm434_vm1, %v433_v0  ;;  %395 = vmatpush3.bf16.msra.mxu0 %v425_v12  ;;  %v327_v18 = vld [vmem:[%s571_s2] ss:$0 sm:$0xff] }
   0x8   :  { %377 = vmatpush3.bf16.msra.mxu1 %v418_v5  ;;  %396 = vmatprep.subr.bf16.mxu0 %v433_v0  ;;  %v330_v30 = vld [vmem:[%s572_s4] ss:$0 sm:$0xff] }
   0x9   :  { %378 = vmatprep.subr.bf16.mxu1 %v433_v0  ;;  %v339_v40 = vld [vmem:[%s573_s6] ss:$0 sm:$0xff] }
   0xb   :  { %397 = vmatpush3.bf16.msra.mxu0 %v426_v13 }
   0xc   :  { %379 = vmatpush3.bf16.msra.mxu1 %v419_v6  ;;  %398 = vmatprep.subr.bf16.mxu0 %v433_v0 }
   0xd   :  { %380 = vmatprep.subr.bf16.mxu1 %v433_v0 }
   0xf   :  { %399 = vmatpush3.bf16.msra.mxu0 %v427_v14 }
  0x10   :  { %381 = vmatpush3.bf16.msra.mxu1 %v420_v7  ;;  %400 = vmatprep.subr.bf16.mxu0 %v433_v0 }
  0x11   :  { %382 = vmatprep.subr.bf16.mxu1 %v433_v0 }
  0x13   :  { %401 = vmatpush3.bf16.msra.mxu0 %v428_v15 }
  0x14   :  { %383 = vmatpush3.bf16.msra.mxu1 %v421_v8  ;;  %402 = vmatprep.subr.bf16.mxu0 %v433_v0 }
  0x15   :  { %384 = vmatprep.subr.bf16.mxu1 %v433_v0 }
  0x17   :  { %403 = vmatpush3.bf16.msra.mxu0 %v429_v16 }
  0x18   :  { %385 = vmatpush3.bf16.msra.mxu1 %v422_v9  ;;  %404 = vmatprep.subr.bf16.mxu0 %v433_v0 }
  0x19   :  { %386 = vmatprep.subr.bf16.mxu1 %v433_v0 }
  0x1b   :  { %405 = vmatpush3.bf16.msra.mxu0 %v430_v17 }
  0x1c   :  { %387 = vmatpush3.bf16.msra.mxu1 %v423_v10  ;;  %406 = vmatprep.subr.bf16.mxu0 %v433_v0 }
  0x1d   :  { %388 = vmatprep.subr.bf16.mxu1 %v433_v0 }
  0x1f   :  { %407 = vmatpush3.bf16.msra.mxu0 %v431_v28 }
  0x20   :  { %389 = vmatpush3.bf16.msra.mxu1 %v424_v11  ;;  %408 = vmatprep.subr.bf16.mxu0 %v433_v0 }
  0x23   :  { %409 = vmatpush3.bf16.msra.mxu0 %v432_v29 }
  0xd9   :  { %v84_v19 = vpop.f32.mrb[0].mxu0 }
  0xda   :  { %v85_v20 = vadd.f32 %v327_v18, %v84_v19  ;;  %v372_v21 = vpop.f32.mrb[1].mxu0 }
  0xdb   :  { %v87_v22 = vpop.f32.mrb[2].mxu0 }
  0xdc   :  { %v88_v23 = vadd.f32 %v327_v18, %v87_v22  ;;  %v373_v24 = vpop.f32.mrb[3].mxu0  ;;  %v91_v25 = vmax.f32 %v85_v20, 0.0 }
  0xde   :  { %v92_v26 = vmax.f32 %v88_v23, 0.0 }
  0xe0   :  { %v93_v27 = vpack.c.bf16 %v92_v26, %v91_v25 }
  0xe2   :  { %391 = vmatmul.mubr.bf16.vlgmr.msra.gmra.mrb[0].mxu1 %v93_v27 }
 0x1b5   :  { %v199_v31 = vpop.f32.mrb[0].mxu1 }
 0x1b6   :  { %v200_v32 = vadd.f32 %v330_v30, %v199_v31  ;;  %v392_v33 = vpop.f32.mrb[1].mxu1 }
 0x1b7   :  { %v202_v34 = vpop.f32.mrb[2].mxu1 }
 0x1b8   :  { %v203_v35 = vadd.f32 %v330_v30, %v202_v34  ;;  %v393_v36 = vpop.f32.mrb[3].mxu1  ;;  %v206_v37 = vmax.f32 %v200_v32, 0.0 }
 0x1ba   :  { %v207_v38 = vmax.f32 %v203_v35, 0.0 }
 0x1bc   :  { %v208_v39 = vpack.c.bf16 %v207_v38, %v206_v37 }
 0x1be   :  { %411 = vmatmul.mubr.bf16.vlgmr.msra.gmra.mrb[4].mxu0 %v208_v39 }
 0x291   :  { %v314_v41 = vpop.f32.mrb[4].mxu0 }
 0x292   :  { %v315_v42 = vadd.f32 %v339_v40, %v314_v41  ;;  %v412_v43 = vpop.f32.mrb[5].mxu0 }
 0x293   :  { %v317_v44 = vpop.f32.mrb[6].mxu0 }
 0x294   :  { %321 = vst.msk [vmem:[%s574_s7] sm:$0xff] %vm42_vm2, %v315_v42  ;;  %v318_v45 = vadd.f32 %v339_v40, %v317_v44  ;;  %v413_v46 = vpop.f32.mrb[7].mxu0 }
 0x296   :  { %322 = vst.msk [vmem:[%s574_s7 + $0x8] sm:$0xff] %vm42_vm2, %v318_v45 }

</bundles_post_ra>
